<compile_context>
chip_gen: v5e
topology: v5e:2x2
jax: 0.10.0
libtpu: 0.0.40
codegen_flags: <defaults>
</compile_context>

<pallas_src>
import jax
import jax.numpy as jnp
import numpy as np
from jax.experimental import pallas as pl
from jax.experimental.pallas import tpu as pltpu

OUT_DIM = 28 * 28      # 784
H1 = 128
H2 = 256


def _round_up(n: int, m: int) -> int:
    return ((n + m - 1) // m) * m


def _decoder_kernel(x_ref, w1_ref, b1_ref, w2_ref, b2_ref, w3_ref, b3_ref, o_ref):
    # x_ref: [TB, zd] f32; weights bf16; biases f32 [1, N]; o_ref: [TB, 784] f32.
    x = x_ref[...].astype(jnp.bfloat16)     # cast in-kernel (VPU), x read as f32 once
    b1 = b1_ref[...]
    b2 = b2_ref[...]
    b3 = b3_ref[...]

    # Layer 1: MXU matmul (bf16 in, f32 acc) + bias + ReLU (f32).
    h1 = jnp.dot(x, w1_ref[...], preferred_element_type=jnp.float32) + b1
    h1 = jnp.maximum(h1, 0.0).astype(jnp.bfloat16)

    # Layer 2.
    h2 = jnp.dot(h1, w2_ref[...], preferred_element_type=jnp.float32) + b2
    h2 = jnp.maximum(h2, 0.0).astype(jnp.bfloat16)

    # Layer 3 + tanh (EUP), stored directly to the unpadded 784-wide block.
    y = jnp.dot(h2, w3_ref[...], preferred_element_type=jnp.float32) + b3
    o_ref[...] = jnp.tanh(y).astype(o_ref.dtype)


def decoder_forward(x, kernel_params, *, block_b: int = 512):
    """x: [B, zd] float32 -> [B, 784] float32.

    kernel_params: bf16 weights, f32 biases (shape [1, out])."""
    w1, b1, w2, b2, w3, b3 = kernel_params
    B, zd = x.shape

    # Choose the number of grid steps first:
    #   * at least cdiv(B, block_b) so tiles fit the requested block size,
    #   * at least 2 (when B allows) so v7x's two TensorCores both get work.
    n_steps = pl.cdiv(B, block_b)
    if B >= 32:
        n_steps = max(n_steps, 2)
    # Tile that evenly covers B (<= ~16 padded rows per step); multiple of 16
    # because bf16 packs two rows per sublane.
    TB = _round_up(pl.cdiv(B, n_steps), 16)
    Bp = n_steps * TB

    xp = x if Bp == B else jnp.pad(x, ((0, Bp - B), (0, 0)))

    out = pl.pallas_call(
        _decoder_kernel,
        out_shape=jax.ShapeDtypeStruct((Bp, OUT_DIM), jnp.float32),
        grid=(n_steps,),
        in_specs=[
            pl.BlockSpec((TB, zd), lambda i: (i, 0)),          # x: batch-tiled
            pl.BlockSpec(w1.shape, lambda i: (0, 0)),          # weights/biases VMEM-resident
            pl.BlockSpec(b1.shape, lambda i: (0, 0)),
            pl.BlockSpec(w2.shape, lambda i: (0, 0)),
            pl.BlockSpec(b2.shape, lambda i: (0, 0)),
            pl.BlockSpec(w3.shape, lambda i: (0, 0)),
            pl.BlockSpec(b3.shape, lambda i: (0, 0)),
        ],
        out_specs=pl.BlockSpec((TB, OUT_DIM), lambda i: (i, 0)),
        compiler_params=pltpu.CompilerParams(
            dimension_semantics=("parallel",),
        ),
    )(xp, w1, b1, w2, b2, w3, b3)

    return out if Bp == B else out[:B]


def init_params(key, zd):
    """f32 params matching PyTorch nn.Linear default init
    (uniform(-1/sqrt(fan_in), 1/sqrt(fan_in))). Biases kept as [1, out]."""
    dims = [(zd, H1), (H1, H2), (H2, OUT_DIM)]
    params = []
    for fan_in, fan_out in dims:
        key, kw, kb = jax.random.split(key, 3)
        bound = 1.0 / np.sqrt(fan_in)
        w = jax.random.uniform(kw, (fan_in, fan_out), jnp.float32, -bound, bound)
        b = jax.random.uniform(kb, (1, fan_out), jnp.float32, -bound, bound)
        params += [w, b]
    return tuple(params)


def prepare_params(params_f32):
    """Kernel layout: bf16 weights (halves weight DMA), f32 biases. No padding."""
    w1, b1, w2, b2, w3, b3 = params_f32
    return (
        w1.astype(jnp.bfloat16), b1,
        w2.astype(jnp.bfloat16), b2,
        w3.astype(jnp.bfloat16), b3,
    )


def decoder_reference_f32(x, params_f32):
    """Original module semantics (pure f32)."""
    w1, b1, w2, b2, w3, b3 = params_f32
    h1 = jnp.maximum(x @ w1 + b1, 0.0)
    h2 = jnp.maximum(h1 @ w2 + b2, 0.0)
    return jnp.tanh(h2 @ w3 + b3)


def decoder_reference_bf16(x, kernel_params):
    """Reference with the same bf16-matmul / f32-accumulate precision as the kernel."""
    w1, b1, w2, b2, w3, b3 = kernel_params
    xb = x.astype(jnp.bfloat16)
    h1 = jnp.maximum(jnp.dot(xb, w1, preferred_element_type=jnp.float32) + b1, 0.0)
    h1 = h1.astype(jnp.bfloat16)
    h2 = jnp.maximum(jnp.dot(h1, w2, preferred_element_type=jnp.float32) + b2, 0.0)
    h2 = h2.astype(jnp.bfloat16)
    y = jnp.dot(h2, w3, preferred_element_type=jnp.float32) + b3
    return jnp.tanh(y)


if __name__ == "__main__":
    key = jax.random.PRNGKey(0)
    zd = 32            # latent dim

    k_params, k_x = jax.random.split(key)
    params_f32 = init_params(k_params, zd)
    kernel_params = prepare_params(params_f32)

    fwd = jax.jit(decoder_forward, static_argnames=("block_b",))

    # Case 1: batch evenly tiled (B=64, block_b=32 -> 2 grid steps, no padding/slice).
    # Case 2: ragged batch (B=70 -> padded rows computed then sliced away).
    for B in (64, 70):
        x = jax.random.normal(jax.random.fold_in(k_x, B), (B, zd), jnp.float32)
        out = jax.block_until_ready(fwd(x, kernel_params, block_b=32))
        assert out.shape == (B, OUT_DIM)

        # Tight check vs a reference using identical (bf16-matmul / f32-acc) precision.
        ref_bf16 = decoder_reference_bf16(x, kernel_params)
        np.testing.assert_allclose(np.asarray(out), np.asarray(ref_bf16),
                                   rtol=2e-3, atol=2e-3)

        # Loose check vs the original pure-f32 module semantics.
        ref_f32 = decoder_reference_f32(x, params_f32)
        max_err = float(jnp.max(jnp.abs(out - ref_f32)))
        assert max_err < 0.1, f"bf16 deviation too large: {max_err}"

    print("KERNEL_OK")
</pallas_src>

<mosaic_0001>
module attributes {stable_mosaic.version = 11 : i64} {
  func.func @_decoder_kernel(%arg0: i32, %arg1: memref<32x32xf32, #tpu.memory_space<vmem>>, %arg2: memref<32x128xbf16, #tpu.memory_space<vmem>>, %arg3: memref<1x128xf32, #tpu.memory_space<vmem>>, %arg4: memref<128x256xbf16, #tpu.memory_space<vmem>>, %arg5: memref<1x256xf32, #tpu.memory_space<vmem>>, %arg6: memref<256x784xbf16, #tpu.memory_space<vmem>>, %arg7: memref<1x784xf32, #tpu.memory_space<vmem>>, %arg8: memref<32x784xf32, #tpu.memory_space<vmem>>) attributes {dimension_semantics = [#tpu.dimension_semantics<parallel>], iteration_bounds = array<i64: 2>, scalar_prefetch = 0 : i64, scratch_operands = 0 : i64, tpu.core_type = #tpu.core_type<tc>, window_params = [{transform_indices = @transform_0, window_bounds = array<i64: 32, 32>}, {pipeline_mode = #tpu.pipeline_mode<synchronous>, transform_indices = @transform_1, window_bounds = array<i64: 32, 128>}, {pipeline_mode = #tpu.pipeline_mode<synchronous>, transform_indices = @transform_2, window_bounds = array<i64: 1, 128>}, {pipeline_mode = #tpu.pipeline_mode<synchronous>, transform_indices = @transform_3, window_bounds = array<i64: 128, 256>}, {pipeline_mode = #tpu.pipeline_mode<synchronous>, transform_indices = @transform_4, window_bounds = array<i64: 1, 256>}, {pipeline_mode = #tpu.pipeline_mode<synchronous>, transform_indices = @transform_5, window_bounds = array<i64: 256, 784>}, {pipeline_mode = #tpu.pipeline_mode<synchronous>, transform_indices = @transform_6, window_bounds = array<i64: 1, 784>}, {transform_indices = @transform_7, window_bounds = array<i64: 32, 784>}]} {
    %c0 = arith.constant 0 : index
    %c0_0 = arith.constant 0 : index
    %0 = vector.load %arg1[%c0, %c0_0] : memref<32x32xf32, #tpu.memory_space<vmem>>, vector<32x32xf32>
    %1 = arith.truncf %0 : vector<32x32xf32> to vector<32x32xbf16>
    %c0_1 = arith.constant 0 : index
    %c0_2 = arith.constant 0 : index
    %2 = vector.load %arg3[%c0_1, %c0_2] : memref<1x128xf32, #tpu.memory_space<vmem>>, vector<1x128xf32>
    %c0_3 = arith.constant 0 : index
    %c0_4 = arith.constant 0 : index
    %3 = vector.load %arg5[%c0_3, %c0_4] : memref<1x256xf32, #tpu.memory_space<vmem>>, vector<1x256xf32>
    %c0_5 = arith.constant 0 : index
    %c0_6 = arith.constant 0 : index
    %4 = vector.load %arg7[%c0_5, %c0_6] : memref<1x784xf32, #tpu.memory_space<vmem>>, vector<1x784xf32>
    %c0_7 = arith.constant 0 : index
    %c0_8 = arith.constant 0 : index
    %5 = vector.load %arg2[%c0_7, %c0_8] : memref<32x128xbf16, #tpu.memory_space<vmem>>, vector<32x128xbf16>
    %cst = arith.constant dense<0.000000e+00> : vector<32x128xf32>
    %6 = tpu.matmul %1, %5, %cst {dimension_numbers = #tpu.dot_dimension_numbers<[1], [0], [0], [1], [0, 0, 1, 1], [], []>} : vector<32x32xbf16>, vector<32x128xbf16>, vector<32x128xf32> -> vector<32x128xf32>
    %7 = vector.broadcast %2 : vector<1x128xf32> to vector<32x128xf32>
    %8 = arith.addf %6, %7 : vector<32x128xf32>
    %cst_9 = arith.constant 0.000000e+00 : f32
    %9 = vector.broadcast %cst_9 : f32 to vector<32x128xf32>
    %10 = arith.maximumf %8, %9 : vector<32x128xf32>
    %11 = arith.truncf %10 : vector<32x128xf32> to vector<32x128xbf16>
    %c0_10 = arith.constant 0 : index
    %c0_11 = arith.constant 0 : index
    %12 = vector.load %arg4[%c0_10, %c0_11] : memref<128x256xbf16, #tpu.memory_space<vmem>>, vector<128x256xbf16>
    %cst_12 = arith.constant dense<0.000000e+00> : vector<32x256xf32>
    %13 = tpu.matmul %11, %12, %cst_12 {dimension_numbers = #tpu.dot_dimension_numbers<[1], [0], [0], [1], [0, 0, 1, 1], [], []>} : vector<32x128xbf16>, vector<128x256xbf16>, vector<32x256xf32> -> vector<32x256xf32>
    %14 = vector.broadcast %3 : vector<1x256xf32> to vector<32x256xf32>
    %15 = arith.addf %13, %14 : vector<32x256xf32>
    %cst_13 = arith.constant 0.000000e+00 : f32
    %16 = vector.broadcast %cst_13 : f32 to vector<32x256xf32>
    %17 = arith.maximumf %15, %16 : vector<32x256xf32>
    %18 = arith.truncf %17 : vector<32x256xf32> to vector<32x256xbf16>
    %c0_14 = arith.constant 0 : index
    %c0_15 = arith.constant 0 : index
    %19 = vector.load %arg6[%c0_14, %c0_15] : memref<256x784xbf16, #tpu.memory_space<vmem>>, vector<256x784xbf16>
    %cst_16 = arith.constant dense<0.000000e+00> : vector<32x784xf32>
    %20 = tpu.matmul %18, %19, %cst_16 {dimension_numbers = #tpu.dot_dimension_numbers<[1], [0], [0], [1], [0, 0, 1, 1], [], []>} : vector<32x256xbf16>, vector<256x784xbf16>, vector<32x784xf32> -> vector<32x784xf32>
    %21 = vector.broadcast %4 : vector<1x784xf32> to vector<32x784xf32>
    %22 = arith.addf %20, %21 : vector<32x784xf32>
    %23 = math.tanh %22 : vector<32x784xf32>
    %c0_17 = arith.constant 0 : index
    %c0_18 = arith.constant 0 : index
    %24 = vector.load %arg8[%c0_17, %c0_18] : memref<32x784xf32, #tpu.memory_space<vmem>>, vector<32x784xf32>
    tpu.vector_store %arg8[%c0_17, %c0_18], %23 {strides = array<i32>} : memref<32x784xf32, #tpu.memory_space<vmem>>, vector<32x784xf32>,
    return
  }
  func.func @transform_0(%arg0: i32) -> (i32, i32) {
    %c0_i32 = arith.constant 0 : i32
    %c0_i32_0 = arith.constant 0 : i32
    return %arg0, %c0_i32 : i32, i32
  }
  func.func @transform_1(%arg0: i32) -> (i32, i32) {
    %c0_i32 = arith.constant 0 : i32
    %c0_i32_0 = arith.constant 0 : i32
    %c0_i32_1 = arith.constant 0 : i32
    return %c0_i32, %c0_i32_0 : i32, i32
  }
  func.func @transform_2(%arg0: i32) -> (i32, i32) {
    %c0_i32 = arith.constant 0 : i32
    %c0_i32_0 = arith.constant 0 : i32
    %c0_i32_1 = arith.constant 0 : i32
    return %c0_i32, %c0_i32_0 : i32, i32
  }
  func.func @transform_3(%arg0: i32) -> (i32, i32) {
    %c0_i32 = arith.constant 0 : i32
    %c0_i32_0 = arith.constant 0 : i32
    %c0_i32_1 = arith.constant 0 : i32
    return %c0_i32, %c0_i32_0 : i32, i32
  }
  func.func @transform_4(%arg0: i32) -> (i32, i32) {
    %c0_i32 = arith.constant 0 : i32
    %c0_i32_0 = arith.constant 0 : i32
    %c0_i32_1 = arith.constant 0 : i32
    return %c0_i32, %c0_i32_0 : i32, i32
  }
  func.func @transform_5(%arg0: i32) -> (i32, i32) {
    %c0_i32 = arith.constant 0 : i32
    %c0_i32_0 = arith.constant 0 : i32
    %c0_i32_1 = arith.constant 0 : i32
    return %c0_i32, %c0_i32_0 : i32, i32
  }
  func.func @transform_6(%arg0: i32) -> (i32, i32) {
    %c0_i32 = arith.constant 0 : i32
    %c0_i32_0 = arith.constant 0 : i32
    %c0_i32_1 = arith.constant 0 : i32
    return %c0_i32, %c0_i32_0 : i32, i32
  }
  func.func @transform_7(%arg0: i32) -> (i32, i32) {
    %c0_i32 = arith.constant 0 : i32
    %c0_i32_0 = arith.constant 0 : i32
    return %arg0, %c0_i32 : i32, i32
  }
}

</mosaic_0001>

<bundles_post_ra>
// kernel: decoder_forward.1
= control target key start
LH: loop header
LB: loop body
LE: loop exit
PB: predicated region body
PF: predicated region fallthrough
CT: control target
= control target key end

     0   :  { %12 = vsyncpa [#allocation3], 0  ;;  %s3447_s0 = inlined_call_operand.vmem [shape: f32[64,32], index: 0, kind: input, shape index: {}]   ;;  %s3448_s1 = inlined_call_operand.vmem [shape: bf16[32,128], index: 1, kind: input, shape index: {}]   ;;  %s3449_s2 = inlined_call_operand.vmem [shape: f32[1,128], index: 2, kind: input, shape index: {}]   ;;  %s3450_s3 = inlined_call_operand.vmem [shape: bf16[128,256], index: 3, kind: input, shape index: {}]   ;;  %s3451_s4 = inlined_call_operand.vmem [shape: f32[1,256], index: 4, kind: input, shape index: {}]   ;;  %s3452_s5 = inlined_call_operand.vmem [shape: bf16[256,784], index: 5, kind: input, shape index: {}]   ;;  %s3453_s6 = inlined_call_operand.vmem [shape: f32[1,784], index: 6, kind: input, shape index: {}]   ;;  %s3454_s7 = inlined_call_operand.hbm [shape: f32[64,784], index: 7, kind: output, shape index: {}]  }
   0x1   :  { %14 = vsyncpa [#allocation3 + $0x1], 0  ;;  %s2482_s24 = smov 0   ;;  %s2484_s25 = smov 0  }
   0x2   :  { %s2486_s26 = smov 0   ;;  %s2488_s27 = smov 0  }
   0x3 LB: > { %s2503_s28 = sadd.s32 4294967295, %s2438_s27   ;;  %s1613_s29 = sadd.s32 4294967294, %s2438_s27   ;;  %s2438_s27 = sphi %s2488_s27, %s3460_s27   ;;  %s2434_s26 = sphi %s2486_s26, %s3459_s26   ;;  %s2430_s25 = sphi %s2484_s25, %s3458_s25   ;;  %s2426_s24 = sphi %s2482_s24, %s3457_s24  }
   0x4   : > { %s2507_s30 = sadd.s32 1, %s2438_s27   ;;  %s179_s8 = sadd.s32 1, %s2434_s26 }
   0x5   : > { %s176_s9 = ssub.s32 %s2438_s27, %s2507_s30  ;;  %p189_p0 = scmp.ne.s32.totalorder %s2434_s26, %s2430_s25 }
   0x6   : > { %p177_p1 = scmp.eq.s32.totalorder %s176_s9, 0  ;;  %p190_p2 = scmp.eq.s32.totalorder %s2503_s28, 1 }
   0x7   : > { %p195_p3 = scmp.ne.s32.totalorder %s2430_s25, %s2426_s24  ;;  %p196_p4 = scmp.eq.s32.totalorder %s1613_s29, 1 }
   0x8   : > { %s2518_s10 = scalar_select %p177_p1, %s2434_s26, %s179_s8  }
   0x9   : > { %p2520_p5 = por %p190_p2, %p189_p0  ;;  %p2524_p6 = por %p196_p4, %p195_p3 }
   0xa   : > { %p1616_p7 = scmp.ge.s32.totalorder %s2438_s27, 1  ;;  %p241_p8 = scmp.lt.s32.totalorder %s2438_s27, 3 }
   0xc   : > { %p242_p9 = pnand %p1616_p7, %p241_p8 }
   0xd   : > { %s1617_s15 = sshll.u32 (!%p242_p9), %s2503_s28, 2  ;;  %s270_s23 = sand.u32 (!%p242_p9), 1, %s2430_s25  }
   0xe   : > { %245 = sbr.rel (%p242_p9) target bundleno = 575 (0x23f), region = 48  ;;  %p274_p10 = scmp.lt.s32.totalorder (!%p242_p9), %s1617_s15, 7 }
   0xf   : > { %s2276_s29 = smul.u32 (!%p242_p9), 224, %s270_s23  ;;  %s2396_s22 = scalar_lea.hbm (!%p242_p9), %s3454_s7, 448 }
  0x10   : > { %s2277_s9 = smul.u32 (!%p242_p9), 224, %s2503_s28  ;;  %s1535_s28 = scalar_lea.sflag (!%p242_p9), [#allocation3], %s270_s23 }
  0x11   : > { %s3374_s8 = scalar_lea.vmem (!%p242_p9), [#allocation2], %s2276_s29 }
  0x12   : > { %s1547_s17 = scalar_lea.hbm (!%p242_p9), %s3454_s7, %s2277_s9 }
  0x13   : > { %v2147_v0 = vld [vmem:[%s3448_s1 + $0x8] sm:$0xff]  ;;  %v1687_v1 = vld [vmem:[%s3450_s3 + $0x70] sm:$0xf]  ;;  %v2146_v2 = vld [vmem:[%s3448_s1] sm:$0xff]  ;;  %s3462_s15 = smov (!%p274_p10, %s1617_s15), 7  ;;  %vm309_vm0 = vcmask 261120  }
  0x14   : > { %v2163_v3 = vld [vmem:[%s3450_s3 + $0x74] sm:$0xf0]  ;;  %v2162_v4 = vld [vmem:[%s3450_s3 + $0x74] sm:$0xf]  ;;  %322 = vmatpush.bf16.msra.mxu0 %v2147_v0  ;;  %v1689_v6 = vld [vmem:[%s3450_s3 + $0x78] sm:$0xf0] }
  0x15   : > { %v1688_v5 = vor.u32 %v2163_v3, %v1687_v1  ;;  %v1679_v7 = vld [vmem:[%s3450_s3 + $0x60] sm:$0xf]  ;;  %v2161_v8 = vld [vmem:[%s3450_s3 + $0x64] sm:$0xf0]  ;;  %v1692_v9 = vor.u32 %v2162_v4, %v1689_v6  ;;  %v2160_v10 = vld [vmem:[%s3450_s3 + $0x64] sm:$0xf] }
  0x16   : > { %v1681_v11 = vld [vmem:[%s3450_s3 + $0x68] sm:$0xf0]  ;;  %v1680_v12 = vor.u32 %v2161_v8, %v1679_v7  ;;  %s1618_s21 = sshll.u32 %s3462_s15, 3  ;;  %v1671_v14 = vld [vmem:[%s3450_s3 + $0x50] sm:$0xf]  ;;  %vm1511_vm1 = vcmask 130048  }
  0x17   : > { %442 = vmatpush.bf16.msra.mxu1 %v1688_v5  ;;  %461 = vmatpush.bf16.msra.mxu2 %v1692_v9  ;;  %v1684_v13 = vor.u32 %v2160_v10, %v1681_v11  ;;  %v2159_v15 = vld [vmem:[%s3450_s3 + $0x54] sm:$0xf0]  ;;  %s277_s14 = scalar_lea.vmem %s3447_s0, %s1618_s21  ;;  %v2158_v16 = vld [vmem:[%s3450_s3 + $0x54] sm:$0xf]  ;;  %v1673_v17 = vld [vmem:[%s3450_s3 + $0x58] sm:$0xf0] }
  0x18   : > { %323 = vmatpush.bf16.msra.mxu0 %v2146_v2  ;;  %v281_v18 = vld [vmem:[%s277_s14] sm:$0xff]  ;;  %v282_v19 = vld [vmem:[%s277_s14 + $0x8] sm:$0xff]  ;;  %v1672_v21 = vor.u32 %v2159_v15, %v1671_v14  ;;  %v1676_v22 = vor.u32 %v2158_v16, %v1673_v17  ;;  %v283_v29 = vld [vmem:[%s277_s14 + $0x10] sm:$0xff]  ;;  %s1548_s15 = sshll.u32 %s3374_s8, 4  ;;  %s1550_s18 = sshll.u32 %s1547_s17, 4  ;;  %s1549_s15 = int_to_ptr.vmem [resolvable:$true] %s1548_s15  ;;  %s1551_s18 = int_to_ptr.hbm [resolvable:$true] %s1550_s18 }
  0x19   : > { %v285_v20 = vpack.c.bf16 %v282_v19, %v281_v18  ;;  %v1663_v23 = vld [vmem:[%s3450_s3 + $0x40] sm:$0xf]  ;;  %v2157_v24 = vld [vmem:[%s3450_s3 + $0x44] sm:$0xf0]  ;;  %v2156_v25 = vld [vmem:[%s3450_s3 + $0x44] sm:$0xf] }
  0x1a   : > { %v1665_v26 = vld [vmem:[%s3450_s3 + $0x48] sm:$0xf0]  ;;  %v1664_v27 = vor.u32 %v2157_v24, %v1663_v23  ;;  %v284_v30 = vld [vmem:[%s277_s14 + $0x18] sm:$0xff]  ;;  %v1655_v32 = vld [vmem:[%s3450_s3 + $0x30] sm:$0xf]  ;;  %s2390_s19 = sshra.s32 %s1551_s18, 4  ;;  %s2391_s19 = int_to_ptr.hbm [resolvable:$true] %s2390_s19 }
  0x1b   : > { %443 = vmatpush.bf16.msra.mxu1 %v1680_v12  ;;  %462 = vmatpush.bf16.msra.mxu2 %v1684_v13  ;;  %v1668_v28 = vor.u32 %v2156_v25, %v1665_v26  ;;  %v286_v31 = vpack.c.bf16 %v284_v30, %v283_v29  ;;  %v2155_v33 = vld [vmem:[%s3450_s3 + $0x34] sm:$0xf0]  ;;  %v2154_v34 = vld [vmem:[%s3450_s3 + $0x34] sm:$0xf]  ;;  %v1657_v36 = vld [vmem:[%s3450_s3 + $0x38] sm:$0xf0]  ;;  %p2397_p0 = scmp.lt.s32.totalorder %s2391_s19, %s3454_s7 }
  0x1c   : > { %1627 = vmatmul.msk.bf16.vlgmr.msra.gmra.mxu0 %vm309_vm0, %v285_v20  ;;  %v1656_v35 = vor.u32 %v2155_v33, %v1655_v32  ;;  %v1660_v37 = vor.u32 %v2154_v34, %v1657_v36  ;;  %v1647_v38 = vld [vmem:[%s3450_s3 + $0x20] sm:$0xf]  ;;  %v2153_v39 = vld [vmem:[%s3450_s3 + $0x24] sm:$0xf0]  ;;  %v2152_v40 = vld [vmem:[%s3450_s3 + $0x24] sm:$0xf] }
  0x1d   : > { %v1648_v41 = vor.u32 %v2153_v39, %v1647_v38  ;;  %v1649_v42 = vld [vmem:[%s3450_s3 + $0x28] sm:$0xf0]  ;;  %v1639_v44 = vld [vmem:[%s3450_s3 + $0x10] sm:$0xf]  ;;  %v2151_v45 = vld [vmem:[%s3450_s3 + $0x14] sm:$0xf0] }
  0x1e   : > { %v1652_v43 = vor.u32 %v2152_v40, %v1649_v42  ;;  %v2150_v46 = vld [vmem:[%s3450_s3 + $0x14] sm:$0xf]  ;;  %v1640_v47 = vor.u32 %v2151_v45, %v1639_v44  ;;  %v1641_v48 = vld [vmem:[%s3450_s3 + $0x18] sm:$0xf0]  ;;  %v1631_v50 = vld [vmem:[%s3450_s3] sm:$0xf] }
  0x1f   : > { %444 = vmatpush.bf16.msra.mxu1 %v1672_v21  ;;  %463 = vmatpush.bf16.msra.mxu2 %v1676_v22  ;;  %v1644_v49 = vor.u32 %v2150_v46, %v1641_v48  ;;  %v2149_v51 = vld [vmem:[%s3450_s3 + $0x4] sm:$0xf0]  ;;  %v2148_v52 = vld [vmem:[%s3450_s3 + $0x4] sm:$0xf]  ;;  %v1633_v54 = vld [vmem:[%s3450_s3 + $0x8] sm:$0xf0] }
  0x20   : > { %v1632_v53 = vor.u32 %v2149_v51, %v1631_v50  ;;  %v1636_v55 = vor.u32 %v2148_v52, %v1633_v54  ;;  %v1891_v56 = vld [vmem:[%s3452_s5 + $0x188] sm:$0xf]  ;;  %v2216_v57 = vld [vmem:[%s3452_s5 + $0x1a0] sm:$0xf0]  ;;  %v2213_v58 = vld [vmem:[%s3452_s5 + $0x18c] sm:$0xf] }
  0x21   : > { %v1892_v60 = vor.u32 %v2216_v57, %v1891_v56  ;;  %v1893_v61 = vld [vmem:[%s3452_s5 + $0x1a4] sm:$0xf0]  ;;  %v1863_v62 = vld [vmem:[%s3452_s5 + $0x150] sm:$0xf]  ;;  %v2209_v63 = vld [vmem:[%s3452_s5 + $0x168] sm:$0xf0] }
  0x22   : > { %v1896_v0 = vor.u32 %v2213_v58, %v1893_v61  ;;  %v2206_v1 = vld [vmem:[%s3452_s5 + $0x154] sm:$0xf]  ;;  %v1865_v2 = vld [vmem:[%s3452_s5 + $0x16c] sm:$0xf0]  ;;  %v2115_v3 = vld [vmem:[%s3452_s5 + $0x348] sm:$0xf]  ;;  %v1864_v4 = vor.u32 %v2209_v63, %v1863_v62 }
  0x23   : > { %445 = vmatpush.bf16.msra.mxu1 %v1664_v27  ;;  %464 = vmatpush.bf16.msra.mxu2 %v1668_v28  ;;  %v2272_v5 = vld [vmem:[%s3452_s5 + $0x360] sm:$0xf0]  ;;  %v2269_v6 = vld [vmem:[%s3452_s5 + $0x34c] sm:$0xf]  ;;  %v2117_v7 = vld [vmem:[%s3452_s5 + $0x364] sm:$0xf0]  ;;  %v1868_v9 = vor.u32 %v2206_v1, %v1865_v2 }
  0x24   : > { %1211 = vmatpush.bf16.msra.mxu3 %v1892_v60  ;;  %v2319_v8 = vld [vmem:[%s3449_s2] ss:$0 sm:$0xff]  ;;  %v2116_v10 = vor.u32 %v2272_v5, %v2115_v3  ;;  %v2120_v11 = vor.u32 %v2269_v6, %v2117_v7  ;;  %v1835_v12 = vld [vmem:[%s3452_s5 + $0x118] sm:$0xf]  ;;  %v2202_v13 = vld [vmem:[%s3452_s5 + $0x130] sm:$0xf0] }
  0x25   : > { %v2199_v14 = vld [vmem:[%s3452_s5 + $0x11c] sm:$0xf]  ;;  %v1837_v15 = vld [vmem:[%s3452_s5 + $0x134] sm:$0xf0]  ;;  %v2087_v16 = vld [vmem:[%s3452_s5 + $0x310] sm:$0xf]  ;;  %v1836_v20 = vor.u32 %v2202_v13, %v1835_v12 }
  0x26   : > { %1230 = vmatpush.bf16.msrb.mxu0 %v2116_v10  ;;  %v2265_v17 = vld [vmem:[%s3452_s5 + $0x328] sm:$0xf0]  ;;  %v2262_v18 = vld [vmem:[%s3452_s5 + $0x314] sm:$0xf]  ;;  %v2089_v19 = vld [vmem:[%s3452_s5 + $0x32c] sm:$0xf0]  ;;  %v1840_v25 = vor.u32 %v2199_v14, %v1837_v15 }
  0x27   : > { %446 = vmatpush.bf16.msra.mxu1 %v1656_v35  ;;  %465 = vmatpush.bf16.msra.mxu2 %v1660_v37  ;;  %v2088_v21 = vor.u32 %v2265_v17, %v2087_v16  ;;  %v2092_v22 = vor.u32 %v2262_v18, %v2089_v19  ;;  %v1807_v23 = vld [vmem:[%s3452_s5 + $0xe0] sm:$0xf]  ;;  %v2195_v26 = vld [vmem:[%s3452_s5 + $0xf8] sm:$0xf0]  ;;  %v2059_v27 = vld [vmem:[%s3452_s5 + $0x2d8] sm:$0xf] }
  0x28   : > { %1212 = vmatpush.bf16.msra.mxu3 %v1864_v4  ;;  %v2258_v28 = vld [vmem:[%s3452_s5 + $0x2f0] sm:$0xf0]  ;;  %v2255_v30 = vld [vmem:[%s3452_s5 + $0x2dc] sm:$0xf]  ;;  %v2192_v33 = vld [vmem:[%s3452_s5 + $0xe4] sm:$0xf]  ;;  %v1808_v37 = vor.u32 %v2195_v26, %v1807_v23 }
  0x29   : > { %v1809_v34 = vld [vmem:[%s3452_s5 + $0xfc] sm:$0xf0]  ;;  %v2060_v35 = vor.u32 %v2258_v28, %v2059_v27  ;;  %v2188_v50 = vld [vmem:[%s3452_s5 + $0xc0] sm:$0xf0]  ;;  %v2185_v51 = vld [vmem:[%s3452_s5 + $0xac] sm:$0xf] }
  0x2a   : > { %1231 = vmatpush.bf16.msrb.mxu0 %v2088_v21  ;;  %v1812_v40 = vor.u32 %v2192_v33, %v1809_v34  ;;  %v2251_v56 = vld [vmem:[%s3452_s5 + $0x2b8] sm:$0xf0]  ;;  %v2248_v57 = vld [vmem:[%s3452_s5 + $0x2a4] sm:$0xf]  ;;  %v1751_v61 = vld [vmem:[%s3452_s5 + $0x70] sm:$0xf] }
  0x2b   : > { %447 = vmatpush.bf16.msra.mxu1 %v1648_v41  ;;  %466 = vmatpush.bf16.msra.mxu2 %v1652_v43  ;;  %v2181_v62 = vld [vmem:[%s3452_s5 + $0x88] sm:$0xf0]  ;;  %v2178_v63 = vld [vmem:[%s3452_s5 + $0x74] sm:$0xf]  ;;  %v1753_v1 = vld [vmem:[%s3452_s5 + $0x8c] sm:$0xf0] }
  0x2c   : > { %1628 = vmatmul.msk.bf16.gmra.mxu0 %vm309_vm0, %v286_v31  ;;  %v2061_v31 = vld [vmem:[%s3452_s5 + $0x2f4] sm:$0xf0]  ;;  %1213 = vmatpush.bf16.msra.mxu3 %v1836_v20  ;;  %v1756_v2 = vor.u32 %v2178_v63, %v1753_v1  ;;  %v2003_v3 = vld [vmem:[%s3452_s5 + $0x268] sm:$0xf]  ;;  %v2244_v4 = vld [vmem:[%s3452_s5 + $0x280] sm:$0xf0] }
  0x2d   : > { %v2064_v36 = vor.u32 %v2255_v30, %v2061_v31  ;;  %v2004_v5 = vor.u32 %v2244_v4, %v2003_v3  ;;  %v2241_v6 = vld [vmem:[%s3452_s5 + $0x26c] sm:$0xf]  ;;  %v2005_v7 = vld [vmem:[%s3452_s5 + $0x284] sm:$0xf0]  ;;  %v2174_v10 = vld [vmem:[%s3452_s5 + $0x50] sm:$0xf0] }
  0x2e   : > { %1232 = vmatpush.bf16.msrb.mxu0 %v2060_v35  ;;  %v1725_v13 = vld [vmem:[%s3452_s5 + $0x54] sm:$0xf0]  ;;  %v1975_v15 = vld [vmem:[%s3452_s5 + $0x230] sm:$0xf]  ;;  %v2237_v16 = vld [vmem:[%s3452_s5 + $0x248] sm:$0xf0] }
  0x2f   : > { %448 = vmatpush.bf16.msra.mxu1 %v1640_v47  ;;  %467 = vmatpush.bf16.msra.mxu2 %v1644_v49  ;;  %v1779_v49 = vld [vmem:[%s3452_s5 + $0xa8] sm:$0xf]  ;;  %v2234_v17 = vld [vmem:[%s3452_s5 + $0x234] sm:$0xf]  ;;  %v1976_v18 = vor.u32 %v2237_v16, %v1975_v15  ;;  %v1977_v19 = vld [vmem:[%s3452_s5 + $0x24c] sm:$0xf0] }
  0x30   : > { %1214 = vmatpush.bf16.msra.mxu3 %v1808_v37  ;;  %v1780_v52 = vor.u32 %v2188_v50, %v1779_v49  ;;  %v1980_v20 = vor.u32 %v2234_v17, %v1977_v19  ;;  %v1695_v21 = vld [vmem:[%s3452_s5] sm:$0xf]  ;;  %v2164_v23 = vld [vmem:[%s3452_s5 + $0x4] sm:$0xf]  ;;  %v1947_v27 = vld [vmem:[%s3452_s5 + $0x1f8] sm:$0xf] }
  0x31   : > { %v2230_v28 = vld [vmem:[%s3452_s5 + $0x210] sm:$0xf0]  ;;  %v1949_v31 = vld [vmem:[%s3452_s5 + $0x214] sm:$0xf0]  ;;  %v1899_v33 = vld [vmem:[%s3452_s5 + $0x190] sm:$0xf] }
  0x32   : > { %v1948_v30 = vor.u32 %v2230_v28, %v1947_v27  ;;  %v2217_v34 = vld [vmem:[%s3452_s5 + $0x1a8] sm:$0xf0]  ;;  %v2214_v35 = vld [vmem:[%s3452_s5 + $0x194] sm:$0xf]  ;;  %v1901_v37 = vld [vmem:[%s3452_s5 + $0x1ac] sm:$0xf0] }
  0x33   : > { %449 = vmatpush.bf16.msra.mxu1 %v1632_v53  ;;  %468 = vmatpush.bf16.msra.mxu2 %v1636_v55  ;;  %v1781_v53 = vld [vmem:[%s3452_s5 + $0xc4] sm:$0xf0]  ;;  %v2031_v55 = vld [vmem:[%s3452_s5 + $0x2a0] sm:$0xf]  ;;  %v1873_v49 = vld [vmem:[%s3452_s5 + $0x174] sm:$0xf0] }
  0x34   : > { %v1784_v54 = vor.u32 %v2185_v51, %v1781_v53  ;;  %1215 = vmatpush.bf16.msra.mxu3 %v1780_v52  ;;  %v2032_v58 = vor.u32 %v2251_v56, %v2031_v55  ;;  %v2123_v51 = vld [vmem:[%s3452_s5 + $0x350] sm:$0xf]  ;;  %v2273_v52 = vld [vmem:[%s3452_s5 + $0x368] sm:$0xf0]  ;;  %v2270_v53 = vld [vmem:[%s3452_s5 + $0x354] sm:$0xf] }
  0x35   : > { %v2125_v55 = vld [vmem:[%s3452_s5 + $0x36c] sm:$0xf0]  ;;  %v2095_v63 = vld [vmem:[%s3452_s5 + $0x318] sm:$0xf]  ;;  %v2263_v1 = vld [vmem:[%s3452_s5 + $0x31c] sm:$0xf] }
  0x36   : > { %1233 = vmatpush.bf16.msrb.mxu0 %v2032_v58  ;;  %v2128_v56 = vor.u32 %v2270_v53, %v2125_v55  ;;  %v2203_v58 = vld [vmem:[%s3452_s5 + $0x138] sm:$0xf0]  ;;  %v2097_v3 = vld [vmem:[%s3452_s5 + $0x334] sm:$0xf0]  ;;  %v2069_v15 = vld [vmem:[%s3452_s5 + $0x2fc] sm:$0xf0] }
  0x37   : > { %1249 = vmatpush.bf16.msrb.mxu1 %v1896_v0  ;;  %1268 = vmatpush.bf16.msrb.mxu2 %v2120_v11  ;;  %v1752_v0 = vor.u32 %v2181_v62, %v1751_v61  ;;  %v2171_v11 = vld [vmem:[%s3452_s5 + $0x3c] sm:$0xf]  ;;  %v1845_v61 = vld [vmem:[%s3452_s5 + $0x13c] sm:$0xf0]  ;;  %v2100_v4 = vor.u32 %v2263_v1, %v2097_v3  ;;  %v1787_v17 = vld [vmem:[%s3452_s5 + $0xb0] sm:$0xf] }
  0x38   : > { %v1728_v14 = vor.u32 %v2171_v11, %v1725_v13  ;;  %v2067_v11 = vld [vmem:[%s3452_s5 + $0x2e0] sm:$0xf]  ;;  %v2256_v13 = vld [vmem:[%s3452_s5 + $0x2e4] sm:$0xf]  ;;  %v2186_v19 = vld [vmem:[%s3452_s5 + $0xb4] sm:$0xf] }
  0x39   : > { %1216 = vmatpush.bf16.msra.mxu3 %v1752_v0  ;;  %v2266_v0 = vld [vmem:[%s3452_s5 + $0x330] sm:$0xf0]  ;;  %v2072_v16 = vor.u32 %v2256_v13, %v2069_v15  ;;  %v2235_v55 = vld [vmem:[%s3452_s5 + $0x23c] sm:$0xf]  ;;  %v1955_v3 = vld [vmem:[%s3452_s5 + $0x200] sm:$0xf] }
  0x3a   : > { %1234 = vmatpush.bf16.msrb.mxu0 %v2004_v5  ;;  %v1815_v5 = vld [vmem:[%s3452_s5 + $0xe8] sm:$0xf]  ;;  %v1907_v13 = vld [vmem:[%s3452_s5 + $0x198] sm:$0xf]  ;;  %v2215_v15 = vld [vmem:[%s3452_s5 + $0x19c] sm:$0xf] }
  0x3b   : > { %1250 = vmatpush.bf16.msrb.mxu1 %v1868_v9  ;;  %1269 = vmatpush.bf16.msrb.mxu2 %v2092_v22  ;;  %v1723_v9 = vld [vmem:[%s3452_s5 + $0x38] sm:$0xf]  ;;  %v2167_v22 = vld [vmem:[%s3452_s5 + $0x18] sm:$0xf0]  ;;  %s2392_s20 = scalar_lea.hbm %s2391_s19, 224 }
  0x3c   : > { %v1724_v12 = vor.u32 %v2174_v10, %v1723_v9  ;;  %v1817_v9 = vld [vmem:[%s3452_s5 + $0x104] sm:$0xf0]  ;;  %p2393_p11 = scmp.ne.s32.totalorder %s2391_s19, %s2392_s20  ;;  %p2398_p1 = scmp.lt.s32.totalorder %s2396_s22, %s2392_s20 }
  0x3e   : > { %1217 = vmatpush.bf16.msra.mxu3 %v1724_v12  ;;  %1235 = vmatpush.bf16.msrb.mxu0 %v1976_v18  ;;  %v2259_v12 = vld [vmem:[%s3452_s5 + $0x2f8] sm:$0xf0]  ;;  %v2189_v18 = vld [vmem:[%s3452_s5 + $0xc8] sm:$0xf0]  ;;  %p2394_p12 = pnand %p2393_p11, %p2520_p5  ;;  %p2399_p2 = por %p2398_p1, %p2397_p0 }
  0x3f   : > { %1251 = vmatpush.bf16.msrb.mxu1 %v1840_v25  ;;  %1270 = vmatpush.bf16.msrb.mxu2 %v2064_v36  ;;  %v1697_v25 = vld [vmem:[%s3452_s5 + $0x1c] sm:$0xf0]  ;;  %v1900_v36 = vor.u32 %v2217_v34, %v1899_v33  ;;  %v2179_v33 = vld [vmem:[%s3452_s5 + $0x7c] sm:$0xf] }
  0x40   : > { %v1700_v26 = vor.u32 %v2164_v23, %v1697_v25  ;;  %v2039_v23 = vld [vmem:[%s3452_s5 + $0x2a8] sm:$0xf]  ;;  %v2249_v25 = vld [vmem:[%s3452_s5 + $0x2ac] sm:$0xf]  ;;  %p2395_p13 = pneg %p2394_p12 }
  0x42   : > { %1236 = vmatpush.bf16.msrb.mxu0 %v1948_v30  ;;  %p2400_p3 = pnand %p2399_p2, %p2395_p13 }
  0x43   : > { %1252 = vmatpush.bf16.msrb.mxu1 %v1812_v40  ;;  %v2223_v40 = vld [vmem:[%s3452_s5 + $0x1d8] sm:$0xf0] }
  0x47   : > { %1253 = vmatpush.bf16.msrb.mxu1 %v1784_v54  ;;  %v2124_v54 = vor.u32 %v2273_v52, %v2123_v51  ;;  %v2238_v51 = vld [vmem:[%s3452_s5 + $0x250] sm:$0xf0] }
  0x4b   : > { %1254 = vmatpush.bf16.msrb.mxu1 %v1756_v2  ;;  %v2096_v2 = vor.u32 %v2266_v0, %v2095_v63 }
  0x4f   : > { %1255 = vmatpush.bf16.msrb.mxu1 %v1728_v14  ;;  %v2068_v14 = vor.u32 %v2259_v12, %v2067_v11 }
  0x53   : > { %1256 = vmatpush.bf16.msrb.mxu1 %v1700_v26  ;;  %v288_v26 = vld [vmem:[%s3451_s4] sm:$0x3] }
  0x54   : > { %v3007_v63 = vperm.slane %v288_v26, 1 }
  0x99   : > { %v325_v59 = vpop.f32.mrf.mxu0 }
  0x9a   : > { %v326_v24 = vadd.f32 %v2319_v8, %v325_v59  ;;  %v2033_v59 = vld [vmem:[%s3452_s5 + $0x2bc] sm:$0xf0] }
  0x9b   : > { %v2036_v60 = vor.u32 %v2248_v57, %v2033_v59  ;;  %v1843_v57 = vld [vmem:[%s3452_s5 + $0x120] sm:$0xf]  ;;  %v2200_v59 = vld [vmem:[%s3452_s5 + $0x124] sm:$0xf] }
  0x9c   : > { %v335_v38 = vmax.f32 %v326_v24, 0.0  ;;  %v1696_v24 = vor.u32 %v2167_v22, %v1695_v21  ;;  %v1848_v62 = vor.u32 %v2200_v59, %v1845_v61  ;;  %v1789_v21 = vld [vmem:[%s3452_s5 + $0xcc] sm:$0xf0]  ;;  %v2165_v61 = vld [vmem:[%s3452_s5 + $0xc] sm:$0xf] }
  0x9d   : > { %1271 = vmatpush.bf16.msrb.mxu2 %v2036_v60  ;;  %v1844_v60 = vor.u32 %v2203_v58, %v1843_v57  ;;  %v1792_v22 = vor.u32 %v2186_v19, %v1789_v21  ;;  %v1703_v57 = vld [vmem:[%s3452_s5 + $0x8] sm:$0xf] }
  0x9e   : > { %1218 = vmatpush.bf16.msra.mxu3 %v1696_v24  ;;  %v2252_v24 = vld [vmem:[%s3452_s5 + $0x2c0] sm:$0xf0]  ;;  %v1927_v21 = vld [vmem:[%s3452_s5 + $0x1c8] sm:$0xf] }
  0x9f   : > { %v2040_v28 = vor.u32 %v2252_v24, %v2039_v23  ;;  %v2221_v23 = vld [vmem:[%s3452_s5 + $0x1cc] sm:$0xf] }
  0xa1   : > { %v327_v29 = vpop.f32.mrf.mxu0 }
  0xa2   : > { %v328_v32 = vadd.f32 %v2319_v8, %v327_v29  ;;  %v2227_v29 = vld [vmem:[%s3452_s5 + $0x1fc] sm:$0xf]  ;;  %1287 = vmatpush.bf16.msrb.mxu3 %v1900_v36  ;;  %v2956_v36 = vperm.slane %v288_v26, 0  ;;  %v1929_v26 = vld [vmem:[%s3452_s5 + $0x1e4] sm:$0xf0] }
  0xa4   : > { %v336_v39 = vmax.f32 %v328_v32, 0.0  ;;  %v1952_v32 = vor.u32 %v2227_v29, %v1949_v31  ;;  %v2041_v29 = vld [vmem:[%s3452_s5 + $0x2c4] sm:$0xf0]  ;;  %v1759_v31 = vld [vmem:[%s3452_s5 + $0x78] sm:$0xf] }
  0xa5   : > { %v2044_v30 = vor.u32 %v2249_v25, %v2041_v29 }
  0xa6   : > { %v339_v41 = vpack.c.bf16 %v336_v39, %v335_v38  ;;  %v1904_v38 = vor.u32 %v2214_v35, %v1901_v37  ;;  %v1919_v39 = vld [vmem:[%s3452_s5 + $0x1c0] sm:$0xf]  ;;  %v1761_v35 = vld [vmem:[%s3452_s5 + $0x94] sm:$0xf0] }
  0xa7   : > { %v1764_v37 = vor.u32 %v2179_v33, %v1761_v35  ;;  %v2208_v33 = vld [vmem:[%s3452_s5 + $0x164] sm:$0xf] }
  0xa8   : > { %450 = vmatmul.bf16.vlgmr.msra.gmra.mxu1 %v339_v41  ;;  %469 = vmatmul.bf16.vlgmr.msra.gmra.mxu2 %v339_v41  ;;  %v2220_v41 = vld [vmem:[%s3452_s5 + $0x1c4] sm:$0xf] }
  0xa9   : > { %v330_v42 = vpop.f32.mrf.mxu0  ;;  %1325 = vmatpush.bf16.msra.mxu1 %v1904_v38  ;;  %v2011_v38 = vld [vmem:[%s3452_s5 + $0x270] sm:$0xf] }
  0xaa   : > { %v331_v43 = vadd.f32 %v2319_v8, %v330_v42  ;;  %v1920_v42 = vor.u32 %v2223_v40, %v1919_v39  ;;  %v2245_v39 = vld [vmem:[%s3452_s5 + $0x288] sm:$0xf0] }
  0xab   : > { %v2012_v40 = vor.u32 %v2245_v39, %v2011_v38  ;;  %v2131_v38 = vld [vmem:[%s3452_s5 + $0x358] sm:$0xf]  ;;  %v2274_v39 = vld [vmem:[%s3452_s5 + $0x370] sm:$0xf0] }
  0xac   : > { %v337_v46 = vmax.f32 %v331_v43, 0.0  ;;  %v1921_v43 = vld [vmem:[%s3452_s5 + $0x1dc] sm:$0xf0]  ;;  %1237 = vmatpush.bf16.msrb.mxu0 %v1920_v42  ;;  %v2013_v42 = vld [vmem:[%s3452_s5 + $0x28c] sm:$0xf0] }
  0xb0   : > { %1306 = vmatpush.bf16.msra.mxu0 %v2124_v54 }
  0xb1   : > { %v332_v44 = vpop.f32.mrf.mxu0 }
  0xb2   : > { %v333_v45 = vadd.f32 %v2319_v8, %v332_v44  ;;  %v2008_v8 = vor.u32 %v2241_v6, %v2005_v7  ;;  %v1924_v44 = vor.u32 %v2220_v41, %v1921_v43  ;;  %v2196_v6 = vld [vmem:[%s3452_s5 + $0x100] sm:$0xf0]  ;;  %v2193_v7 = vld [vmem:[%s3452_s5 + $0xec] sm:$0xf]  ;;  %v2242_v41 = vld [vmem:[%s3452_s5 + $0x274] sm:$0xf] }
  0xb3   : > { %v1820_v10 = vor.u32 %v2193_v7, %v1817_v9  ;;  %v2016_v43 = vor.u32 %v2242_v41, %v2013_v42  ;;  %v1957_v7 = vld [vmem:[%s3452_s5 + $0x21c] sm:$0xf0]  ;;  %v2271_v41 = vld [vmem:[%s3452_s5 + $0x35c] sm:$0xf]  ;;  %v2133_v42 = vld [vmem:[%s3452_s5 + $0x374] sm:$0xf0] }
  0xb4   : > { %v338_v47 = vmax.f32 %v333_v45, 0.0  ;;  %1272 = vmatpush.bf16.msrb.mxu2 %v2008_v8  ;;  %v1871_v45 = vld [vmem:[%s3452_s5 + $0x158] sm:$0xf]  ;;  %1307 = vmatpush.bf16.msra.mxu0 %v2096_v2  ;;  %v1816_v8 = vor.u32 %v2196_v6, %v1815_v5  ;;  %v2228_v6 = vld [vmem:[%s3452_s5 + $0x204] sm:$0xf] }
  0xb6   : > { %v340_v48 = vpack.c.bf16 %v338_v47, %v337_v46  ;;  %v2210_v46 = vld [vmem:[%s3452_s5 + $0x170] sm:$0xf0]  ;;  %v2207_v47 = vld [vmem:[%s3452_s5 + $0x15c] sm:$0xf] }
  0xb7   : > { %v1876_v50 = vor.u32 %v2207_v47, %v1873_v49  ;;  %v1733_v49 = vld [vmem:[%s3452_s5 + $0x5c] sm:$0xf0] }
  0xb8   : > { %455 = vmatmul.bf16.gmra.mxu1 %v340_v48  ;;  %474 = vmatmul.bf16.gmra.mxu2 %v340_v48  ;;  %v1872_v48 = vor.u32 %v2210_v46, %v1871_v45  ;;  %v2175_v45 = vld [vmem:[%s3452_s5 + $0x58] sm:$0xf0]  ;;  %v2172_v46 = vld [vmem:[%s3452_s5 + $0x44] sm:$0xf] }
  0xb9   : > { %1273 = vmatpush.bf16.msrb.mxu2 %v1980_v20  ;;  %1326 = vmatpush.bf16.msra.mxu1 %v1876_v50  ;;  %v1788_v20 = vor.u32 %v2189_v18, %v1787_v17  ;;  %v1983_v50 = vld [vmem:[%s3452_s5 + $0x238] sm:$0xf]  ;;  %v1736_v53 = vor.u32 %v2172_v46, %v1733_v49  ;;  %v2201_v46 = vld [vmem:[%s3452_s5 + $0x12c] sm:$0xf]  ;;  %v1853_v49 = vld [vmem:[%s3452_s5 + $0x144] sm:$0xf0] }
  0xba   : > { %1288 = vmatpush.bf16.msrb.mxu3 %v1872_v48  ;;  %1308 = vmatpush.bf16.msra.mxu0 %v2068_v14  ;;  %v1984_v54 = vor.u32 %v2238_v51, %v1983_v50  ;;  %v2218_v14 = vld [vmem:[%s3452_s5 + $0x1b0] sm:$0xf0]  ;;  %v1909_v18 = vld [vmem:[%s3452_s5 + $0x1b4] sm:$0xf0]  ;;  %v2103_v50 = vld [vmem:[%s3452_s5 + $0x320] sm:$0xf] }
  0xbb   : > { %v1908_v17 = vor.u32 %v2218_v14, %v1907_v13  ;;  %v2267_v51 = vld [vmem:[%s3452_s5 + $0x338] sm:$0xf0]  ;;  %v1795_v13 = vld [vmem:[%s3452_s5 + $0xb8] sm:$0xf]  ;;  %v2190_v14 = vld [vmem:[%s3452_s5 + $0xd0] sm:$0xf0] }
  0xbd   : > { %1274 = vmatpush.bf16.msrb.mxu2 %v1952_v32  ;;  %1327 = vmatpush.bf16.msra.mxu1 %v1848_v62  ;;  %v2182_v32 = vld [vmem:[%s3452_s5 + $0x90] sm:$0xf0]  ;;  %v1705_v62 = vld [vmem:[%s3452_s5 + $0x24] sm:$0xf0] }
  0xbe   : > { %1289 = vmatpush.bf16.msrb.mxu3 %v1844_v60  ;;  %1309 = vmatpush.bf16.msra.mxu0 %v2040_v28  ;;  %v1760_v34 = vor.u32 %v2182_v32, %v1759_v31  ;;  %v2168_v60 = vld [vmem:[%s3452_s5 + $0x20] sm:$0xf0]  ;;  %v1708_v2 = vor.u32 %v2165_v61, %v1705_v62  ;;  %v2211_v28 = vld [vmem:[%s3452_s5 + $0x178] sm:$0xf0]  ;;  %v1932_v31 = vor.u32 %v2221_v23, %v1929_v26  ;;  %v2194_v61 = vld [vmem:[%s3452_s5 + $0xf4] sm:$0xf] }
  0xbf   : > { %v1704_v1 = vor.u32 %v2168_v60, %v1703_v57  ;;  %v1823_v57 = vld [vmem:[%s3452_s5 + $0xf0] sm:$0xf]  ;;  %v2197_v60 = vld [vmem:[%s3452_s5 + $0x108] sm:$0xf0]  ;;  %v2250_v23 = vld [vmem:[%s3452_s5 + $0x2b4] sm:$0xf] }
  0xc0   : > { %v1825_v62 = vld [vmem:[%s3452_s5 + $0x10c] sm:$0xf0]  ;;  %v2183_v26 = vld [vmem:[%s3452_s5 + $0x98] sm:$0xf0] }
  0xc1   : > { %1275 = vmatpush.bf16.msrb.mxu2 %v1924_v44  ;;  %1328 = vmatpush.bf16.msra.mxu1 %v1820_v10  ;;  %v1731_v44 = vld [vmem:[%s3452_s5 + $0x40] sm:$0xf]  ;;  %v1960_v10 = vor.u32 %v2228_v6, %v1957_v7  ;;  %v2257_v6 = vld [vmem:[%s3452_s5 + $0x2ec] sm:$0xf] }
  0xc2   : > { %1290 = vmatpush.bf16.msrb.mxu3 %v1816_v8  ;;  %1310 = vmatpush.bf16.msra.mxu0 %v2012_v40  ;;  %v1732_v48 = vor.u32 %v2175_v45, %v1731_v44  ;;  %v2132_v40 = vor.u32 %v2274_v39, %v2131_v38  ;;  %v1851_v44 = vld [vmem:[%s3452_s5 + $0x128] sm:$0xf]  ;;  %v2204_v45 = vld [vmem:[%s3452_s5 + $0x140] sm:$0xf0]  ;;  %v2246_v38 = vld [vmem:[%s3452_s5 + $0x290] sm:$0xf0] }
  0xc3   : > { %v2243_v39 = vld [vmem:[%s3452_s5 + $0x27c] sm:$0xf] }
  0xc5   : > { %1344 = vmatpush.bf16.msra.mxu2 %v2128_v56  ;;  %1329 = vmatpush.bf16.msra.mxu1 %v1792_v22  ;;  %v1985_v56 = vld [vmem:[%s3452_s5 + $0x254] sm:$0xf0]  ;;  %v2224_v22 = vld [vmem:[%s3452_s5 + $0x1e0] sm:$0xf0] }
  0xc6   : > { %1291 = vmatpush.bf16.msrb.mxu3 %v1788_v20  ;;  %v1988_v59 = vor.u32 %v2235_v55, %v1985_v56  ;;  %1311 = vmatpush.bf16.msra.mxu0 %v1984_v54  ;;  %v1912_v20 = vor.u32 %v2215_v15, %v1909_v18  ;;  %v1928_v25 = vor.u32 %v2224_v22, %v1927_v21  ;;  %v2264_v55 = vld [vmem:[%s3452_s5 + $0x324] sm:$0xf]  ;;  %v2105_v56 = vld [vmem:[%s3452_s5 + $0x33c] sm:$0xf0]  ;;  %v2187_v15 = vld [vmem:[%s3452_s5 + $0xbc] sm:$0xf] }
  0xc7   : > { %v2104_v54 = vor.u32 %v2267_v51, %v2103_v50  ;;  %v1797_v18 = vld [vmem:[%s3452_s5 + $0xd4] sm:$0xf0]  ;;  %v2047_v21 = vld [vmem:[%s3452_s5 + $0x2b0] sm:$0xf]  ;;  %v2253_v22 = vld [vmem:[%s3452_s5 + $0x2c8] sm:$0xf0] }
  0xc9   : > { %1345 = vmatpush.bf16.msra.mxu2 %v2100_v4  ;;  %1330 = vmatpush.bf16.msra.mxu1 %v1764_v37  ;;  %v2231_v4 = vld [vmem:[%s3452_s5 + $0x218] sm:$0xf0] }
  0xca   : > { %1292 = vmatpush.bf16.msrb.mxu3 %v1760_v34  ;;  %v1956_v5 = vor.u32 %v2231_v4, %v1955_v3  ;;  %v1881_v34 = vld [vmem:[%s3452_s5 + $0x17c] sm:$0xf0]  ;;  %v2260_v3 = vld [vmem:[%s3452_s5 + $0x300] sm:$0xf0]  ;;  %v1828_v4 = vor.u32 %v2194_v61, %v1825_v62  ;;  %v2229_v62 = vld [vmem:[%s3452_s5 + $0x20c] sm:$0xf] }
  0xcb   : > { %v1884_v35 = vor.u32 %v2208_v33, %v1881_v34  ;;  %v2232_v61 = vld [vmem:[%s3452_s5 + $0x220] sm:$0xf0] }
  0xcc   : > { %1312 = vmatpush.bf16.msra.mxu0 %v1956_v5 }
  0xcd   : > { %1346 = vmatpush.bf16.msra.mxu2 %v2072_v16  ;;  %1331 = vmatpush.bf16.msra.mxu1 %v1736_v53  ;;  %v1856_v53 = vor.u32 %v2201_v46, %v1853_v49  ;;  %v2239_v49 = vld [vmem:[%s3452_s5 + $0x258] sm:$0xf0] }
  0xce   : > { %1293 = vmatpush.bf16.msrb.mxu3 %v1732_v48  ;;  %v1852_v48 = vor.u32 %v2204_v45, %v1851_v44  ;;  %v2176_v44 = vld [vmem:[%s3452_s5 + $0x60] sm:$0xf0]  ;;  %v2173_v45 = vld [vmem:[%s3452_s5 + $0x4c] sm:$0xf] }
  0xd0   : > { %1313 = vmatpush.bf16.msra.mxu0 %v1928_v25  ;;  %v1767_v25 = vld [vmem:[%s3452_s5 + $0x80] sm:$0xf] }
  0xd1   : > { %1347 = vmatpush.bf16.msra.mxu2 %v2044_v30  ;;  %1332 = vmatpush.bf16.msra.mxu1 %v1708_v2  ;;  %v2075_v2 = vld [vmem:[%s3452_s5 + $0x2e8] sm:$0xf] }
  0xd2   : > { %1294 = vmatpush.bf16.msrb.mxu3 %v1704_v1  ;;  %v1824_v1 = vor.u32 %v2197_v60, %v1823_v57  ;;  %v2076_v5 = vor.u32 %v2260_v3, %v2075_v2  ;;  %v2166_v57 = vld [vmem:[%s3452_s5 + $0x14] sm:$0xf]  ;;  %v1963_v60 = vld [vmem:[%s3452_s5 + $0x208] sm:$0xf] }
  0xd3   : > { %v1965_v2 = vld [vmem:[%s3452_s5 + $0x224] sm:$0xf0] }
  0xd4   : > { %v1968_v3 = vor.u32 %v2229_v62, %v1965_v2  ;;  %v3367_v62 = vld [vmem:[%s3453_s6] sm:$0x7f] }
  0xd5   : > { %1348 = vmatpush.bf16.msra.mxu2 %v2016_v43  ;;  %v2136_v43 = vor.u32 %v2271_v41, %v2133_v42  ;;  %v2021_v41 = vld [vmem:[%s3452_s5 + $0x294] sm:$0xf0] }
  0xd6   : > { %v2024_v42 = vor.u32 %v2243_v39, %v2021_v41  ;;  %v1775_v39 = vld [vmem:[%s3452_s5 + $0x88] sm:$0xf]  ;;  %v2184_v41 = vld [vmem:[%s3452_s5 + $0xa0] sm:$0xf0] }
  0xd9   : > { %1349 = vmatpush.bf16.msra.mxu2 %v1988_v59  ;;  %v2108_v59 = vor.u32 %v2264_v55, %v2105_v56  ;;  %v2169_v56 = vld [vmem:[%s3452_s5 + $0x28] sm:$0xf0] }
  0xdd   : > { %1350 = vmatpush.bf16.msra.mxu2 %v1960_v10 }
  0xe1   : > { %1351 = vmatpush.bf16.msra.mxu2 %v1932_v31  ;;  %v2180_v31 = vld [vmem:[%s3452_s5 + $0x84] sm:$0xf] }
 0x125   : > { %v451_v27 = vpop.f32.mrf.mxu1 }
 0x126   : > { %v452_v52 = vadd.f32 %v451_v27, %v2956_v36  ;;  %v1879_v27 = vld [vmem:[%s3452_s5 + $0x160] sm:$0xf] }
 0x127   : > { %v1880_v32 = vor.u32 %v2211_v28, %v1879_v27 }
 0x128   : > { %v480_v8 = vmax.f32 %v452_v52, 0.0 }
 0x12b   : > { %v470_v47 = vpop.f32.mrf.mxu2 }
 0x12c   : > { %v471_v11 = vadd.f32 %v470_v47, %v3007_v63 }
 0x12d   : > { %v453_v58 = vpop.f32.mrf.mxu1 }
 0x12e   : > { %v454_v0 = vadd.f32 %v453_v58, %v2956_v36  ;;  %v481_v29 = vmax.f32 %v471_v11, 0.0 }
 0x130   : > { %v482_v9 = vmax.f32 %v454_v0, 0.0 }
 0x132   : > { %v3023_v12 = vpack.c.bf16 %v482_v9, %v480_v8 }
 0x133   : > { %v472_v16 = vpop.f32.mrf.mxu2 }
 0x134   : > { %v473_v19 = vadd.f32 %v472_v16, %v3007_v63  ;;  %1219 = vmatmul.bf16.vlgmr.msra.gmra.mxu3 %v3023_v12  ;;  %1257 = vmatmul.bf16.vlgmr.msrb.gmra.mxu1 %v3023_v12 }
 0x135   : > { %v456_v24 = vpop.f32.mrf.mxu1  ;;  %1363 = vmatpush.bf16.msra.mxu3 %v1908_v17  ;;  %1401 = vmatpush.bf16.msrb.mxu1 %v1912_v20  ;;  %v1796_v17 = vor.u32 %v2190_v14, %v1795_v13  ;;  %v1800_v20 = vor.u32 %v2187_v15, %v1797_v18  ;;  %v1887_v13 = vld [vmem:[%s3452_s5 + $0x168] sm:$0xf]  ;;  %v2212_v14 = vld [vmem:[%s3452_s5 + $0x180] sm:$0xf0]  ;;  %v2275_v18 = vld [vmem:[%s3452_s5 + $0x378] sm:$0xf0] }
 0x136   : > { %v483_v30 = vmax.f32 %v473_v19, 0.0  ;;  %v457_v52 = vadd.f32 %v456_v24, %v2956_v36  ;;  %v2049_v24 = vld [vmem:[%s3452_s5 + $0x2cc] sm:$0xf0] }
 0x138   : > { %v3064_v37 = vpack.c.bf16 %v483_v30, %v481_v29  ;;  %v484_v7 = vmax.f32 %v457_v52, 0.0  ;;  %v2052_v29 = vor.u32 %v2250_v23, %v2049_v24  ;;  %v1768_v30 = vor.u32 %v2183_v26, %v1767_v25  ;;  %v2236_v52 = vld [vmem:[%s3452_s5 + $0x244] sm:$0xf]  ;;  %v1831_v24 = vld [vmem:[%s3452_s5 + $0xf8] sm:$0xf] }
 0x139   : > { %1364 = vmatpush.bf16.msra.mxu3 %v1880_v32  ;;  %1402 = vmatpush.bf16.msrb.mxu1 %v1884_v35  ;;  %v1769_v32 = vld [vmem:[%s3452_s5 + $0x9c] sm:$0xf0]  ;;  %v2019_v35 = vld [vmem:[%s3452_s5 + $0x278] sm:$0xf]  ;;  %v2198_v25 = vld [vmem:[%s3452_s5 + $0x110] sm:$0xf0] }
 0x13a   : > { %1238 = vmatmul.bf16.vlgmr.msrb.gmra.mxu0 %v3064_v37  ;;  %1276 = vmatmul.bf16.vlgmr.msrb.gmra.mxu2 %v3064_v37  ;;  %v1772_v33 = vor.u32 %v2180_v31, %v1769_v32  ;;  %v1803_v31 = vld [vmem:[%s3452_s5 + $0xc0] sm:$0xf]  ;;  %v2191_v32 = vld [vmem:[%s3452_s5 + $0xd8] sm:$0xf0] }
 0x13b   : > { %v475_v47 = vpop.f32.mrf.mxu2  ;;  %1382 = vmatpush.bf16.msrb.mxu0 %v2132_v40  ;;  %1420 = vmatpush.bf16.msrb.mxu2 %v2136_v43  ;;  %v2020_v40 = vor.u32 %v2246_v38, %v2019_v35  ;;  %v1739_v43 = vld [vmem:[%s3452_s5 + $0x48] sm:$0xf]  ;;  %v2055_v35 = vld [vmem:[%s3452_s5 + $0x2b8] sm:$0xf]  ;;  %v2254_v38 = vld [vmem:[%s3452_s5 + $0x2d0] sm:$0xf0] }
 0x13c   : > { %v476_v10 = vadd.f32 %v475_v47, %v3007_v63  ;;  %v1740_v46 = vor.u32 %v2176_v44, %v1739_v43  ;;  %v1741_v47 = vld [vmem:[%s3452_s5 + $0x64] sm:$0xf0]  ;;  %v2027_v43 = vld [vmem:[%s3452_s5 + $0x280] sm:$0xf]  ;;  %v2247_v44 = vld [vmem:[%s3452_s5 + $0x298] sm:$0xf0] }
 0x13d   : > { %v458_v58 = vpop.f32.mrf.mxu1  ;;  %1365 = vmatpush.bf16.msra.mxu3 %v1852_v48  ;;  %1403 = vmatpush.bf16.msrb.mxu1 %v1856_v53  ;;  %v1991_v48 = vld [vmem:[%s3452_s5 + $0x240] sm:$0xf]  ;;  %v1744_v50 = vor.u32 %v2173_v45, %v1741_v47  ;;  %v2028_v45 = vor.u32 %v2247_v44, %v2027_v43  ;;  %v2177_v47 = vld [vmem:[%s3452_s5 + $0x68] sm:$0xf0] }
 0x13e   : > { %v459_v0 = vadd.f32 %v458_v58, %v2956_v36  ;;  %v2077_v36 = vld [vmem:[%s3452_s5 + $0x304] sm:$0xf0]  ;;  %v485_v27 = vmax.f32 %v476_v10, 0.0  ;;  %v1992_v51 = vor.u32 %v2239_v49, %v1991_v48  ;;  %v1993_v53 = vld [vmem:[%s3452_s5 + $0x25c] sm:$0xf0] }
 0x13f   : > { %1383 = vmatpush.bf16.msrb.mxu0 %v2104_v54  ;;  %1421 = vmatpush.bf16.msrb.mxu2 %v2108_v59  ;;  %v2080_v9 = vor.u32 %v2257_v6, %v2077_v36  ;;  %v1711_v54 = vld [vmem:[%s3452_s5 + $0x10] sm:$0xf]  ;;  %v1996_v55 = vor.u32 %v2236_v52, %v1993_v53  ;;  %v1999_v48 = vld [vmem:[%s3452_s5 + $0x248] sm:$0xf]  ;;  %v2170_v52 = vld [vmem:[%s3452_s5 + $0x30] sm:$0xf0] }
 0x140   : > { %v486_v8 = vmax.f32 %v459_v0, 0.0  ;;  %v1713_v58 = vld [vmem:[%s3452_s5 + $0x2c] sm:$0xf0]  ;;  %v1712_v59 = vor.u32 %v2169_v56, %v1711_v54 }
 0x141   : > { %1366 = vmatpush.bf16.msra.mxu3 %v1824_v1  ;;  %1404 = vmatpush.bf16.msrb.mxu1 %v1828_v4  ;;  %v1716_v0 = vor.u32 %v2166_v57, %v1713_v58  ;;  %v1964_v1 = vor.u32 %v2232_v61, %v1963_v60  ;;  %v1915_v4 = vld [vmem:[%s3452_s5 + $0x1a0] sm:$0xf]  ;;  %v1935_v36 = vld [vmem:[%s3452_s5 + $0x1d0] sm:$0xf]  ;;  %v1943_v58 = vld [vmem:[%s3452_s5 + $0x1d8] sm:$0xf] }
 0x142   : > { %v3131_v11 = vpack.c.bf16 %v486_v8, %v484_v7  ;;  %v2225_v7 = vld [vmem:[%s3452_s5 + $0x1e8] sm:$0xf0]  ;;  %v2222_v8 = vld [vmem:[%s3452_s5 + $0x1d4] sm:$0xf]  ;;  %v1937_v10 = vld [vmem:[%s3452_s5 + $0x1ec] sm:$0xf0] }
 0x143   : > { %v477_v16 = vpop.f32.mrf.mxu2  ;;  %1384 = vmatpush.bf16.msrb.mxu0 %v2076_v5  ;;  %1422 = vmatpush.bf16.msrb.mxu2 %v2080_v9  ;;  %v2219_v5 = vld [vmem:[%s3452_s5 + $0x1b8] sm:$0xf0]  ;;  %v1936_v9 = vor.u32 %v2225_v7, %v1935_v36  ;;  %v1940_v15 = vor.u32 %v2222_v8, %v1937_v10  ;;  %v1971_v54 = vld [vmem:[%s3452_s5 + $0x210] sm:$0xf] }
 0x144   : > { %v478_v19 = vadd.f32 %v477_v16, %v3007_v63  ;;  %1224 = vmatmul.bf16.gmra.mxu3 %v3131_v11  ;;  %1262 = vmatmul.bf16.gmra.mxu1 %v3131_v11  ;;  %v2048_v63 = vor.u32 %v2253_v22, %v2047_v21  ;;  %v1916_v6 = vor.u32 %v2219_v5, %v1915_v4  ;;  %v2205_v21 = vld [vmem:[%s3452_s5 + $0x148] sm:$0xf0]  ;;  %v2111_v22 = vld [vmem:[%s3452_s5 + $0x328] sm:$0xf] }
 0x145   : > { %1367 = vmatpush.bf16.msra.mxu3 %v1796_v17  ;;  %1405 = vmatpush.bf16.msrb.mxu1 %v1800_v20  ;;  %v1888_v16 = vor.u32 %v2212_v14, %v1887_v13  ;;  %v2139_v17 = vld [vmem:[%s3452_s5 + $0x360] sm:$0xf]  ;;  %v1859_v20 = vld [vmem:[%s3452_s5 + $0x130] sm:$0xf] }
 0x146   : > { %v487_v28 = vmax.f32 %v478_v19, 0.0  ;;  %v2140_v19 = vor.u32 %v2275_v18, %v2139_v17  ;;  %v1860_v23 = vor.u32 %v2205_v21, %v1859_v20 }
 0x147   : > { %1385 = vmatpush.bf16.msrb.mxu0 %v2048_v63  ;;  %1423 = vmatpush.bf16.msrb.mxu2 %v2052_v29  ;;  %v2268_v63 = vld [vmem:[%s3452_s5 + $0x340] sm:$0xf0]  ;;  %v1832_v29 = vor.u32 %v2198_v25, %v1831_v24 }
 0x148   : > { %v3172_v34 = vpack.c.bf16 %v487_v28, %v485_v27  ;;  %v2112_v26 = vor.u32 %v2268_v63, %v2111_v22  ;;  %v2083_v27 = vld [vmem:[%s3452_s5 + $0x2f0] sm:$0xf]  ;;  %v2261_v28 = vld [vmem:[%s3452_s5 + $0x308] sm:$0xf0] }
 0x149   : > { %1368 = vmatpush.bf16.msra.mxu3 %v1768_v30  ;;  %1406 = vmatpush.bf16.msrb.mxu1 %v1772_v33  ;;  %v2084_v30 = vor.u32 %v2261_v28, %v2083_v27  ;;  %v1804_v33 = vor.u32 %v2191_v32, %v1803_v31 }
 0x14a   : > { %1243 = vmatmul.bf16.gmra.mxu0 %v3172_v34  ;;  %1281 = vmatmul.bf16.gmra.mxu2 %v3172_v34 }
 0x14b   : > { %1386 = vmatpush.bf16.msrb.mxu0 %v2020_v40  ;;  %1424 = vmatpush.bf16.msrb.mxu2 %v2024_v42  ;;  %v2056_v40 = vor.u32 %v2254_v38, %v2055_v35  ;;  %v1776_v42 = vor.u32 %v2184_v41, %v1775_v39 }
 0x14d   : > { %1369 = vmatpush.bf16.msra.mxu3 %v1740_v46  ;;  %1407 = vmatpush.bf16.msrb.mxu1 %v1744_v50  ;;  %v1747_v46 = vld [vmem:[%s3452_s5 + $0x50] sm:$0xf]  ;;  %v2240_v50 = vld [vmem:[%s3452_s5 + $0x260] sm:$0xf0] }
 0x14e   : > { %v1748_v49 = vor.u32 %v2177_v47, %v1747_v46  ;;  %v2000_v53 = vor.u32 %v2240_v50, %v1999_v48 }
 0x14f   : > { %1387 = vmatpush.bf16.msrb.mxu0 %v1992_v51  ;;  %1425 = vmatpush.bf16.msrb.mxu2 %v1996_v55  ;;  %v1719_v51 = vld [vmem:[%s3452_s5 + $0x18] sm:$0xf]  ;;  %v2233_v55 = vld [vmem:[%s3452_s5 + $0x228] sm:$0xf0] }
 0x150   : > { %v1720_v56 = vor.u32 %v2170_v52, %v1719_v51  ;;  %v1972_v57 = vor.u32 %v2233_v55, %v1971_v54 }
 0x151   : > { %1370 = vmatpush.bf16.msra.mxu3 %v1712_v59  ;;  %1408 = vmatpush.bf16.msrb.mxu1 %v1716_v0  ;;  %v2226_v59 = vld [vmem:[%s3452_s5 + $0x1f0] sm:$0xf0]  ;;  %v621_v0 = vperm.slane %v3367_v62, 0 }
 0x152   : > { %v1944_v60 = vor.u32 %v2226_v59, %v1943_v58 }
 0x153   : > { %1388 = vmatpush.bf16.msrb.mxu0 %v1964_v1  ;;  %1426 = vmatpush.bf16.msrb.mxu2 %v1968_v3  ;;  %v622_v3 = vperm.slane %v3367_v62, 1 }
 0x154   : > { %1295 = vmatmul.bf16.vlgmr.msrb.gmra.mxu3 %v3023_v12  ;;  %1333 = vmatmul.bf16.vlgmr.msra.gmra.mxu1 %v3023_v12 }
 0x155   : > { %1439 = vmatpush.bf16.msrb.mxu3 %v1916_v6 }
 0x157   : > { %1389 = vmatpush.bf16.msrb.mxu0 %v1936_v9  ;;  %1427 = vmatpush.bf16.msrb.mxu2 %v1940_v15 }
 0x159   : > { %1440 = vmatpush.bf16.msrb.mxu3 %v1888_v16 }
 0x15a   : > { %1314 = vmatmul.bf16.vlgmr.msra.gmra.mxu0 %v3064_v37  ;;  %1352 = vmatmul.bf16.vlgmr.msra.gmra.mxu2 %v3064_v37 }
 0x15b   : > { %1458 = vmatpush.bf16.msra.mxu0 %v2140_v19 }
 0x15d   : > { %1441 = vmatpush.bf16.msrb.mxu3 %v1860_v23 }
 0x15f   : > { %1459 = vmatpush.bf16.msra.mxu0 %v2112_v26 }
 0x161   : > { %1442 = vmatpush.bf16.msrb.mxu3 %v1832_v29 }
 0x163   : > { %1460 = vmatpush.bf16.msra.mxu0 %v2084_v30 }
 0x164   : > { %1300 = vmatmul.bf16.gmra.mxu3 %v3131_v11  ;;  %1338 = vmatmul.bf16.gmra.mxu1 %v3131_v11 }
 0x165   : > { %1443 = vmatpush.bf16.msrb.mxu3 %v1804_v33  ;;  %v623_v33 = vperm.slane %v3367_v62, 2 }
 0x167   : > { %1461 = vmatpush.bf16.msra.mxu0 %v2056_v40 }
 0x169   : > { %1444 = vmatpush.bf16.msrb.mxu3 %v1776_v42  ;;  %v624_v42 = vperm.slane %v3367_v62, 3 }
 0x16a   : > { %1319 = vmatmul.bf16.gmra.mxu0 %v3172_v34  ;;  %1357 = vmatmul.bf16.gmra.mxu2 %v3172_v34 }
 0x16b   : > { %1462 = vmatpush.bf16.msra.mxu0 %v2028_v45 }
 0x16d   : > { %1445 = vmatpush.bf16.msrb.mxu3 %v1748_v49 }
 0x16f   : > { %1463 = vmatpush.bf16.msra.mxu0 %v2000_v53 }
 0x171   : > { %1446 = vmatpush.bf16.msrb.mxu3 %v1720_v56 }
 0x173   : > { %1464 = vmatpush.bf16.msra.mxu0 %v1972_v57 }
 0x174   : > { %1371 = vmatmul.bf16.vlgmr.msra.gmra.mxu3 %v3023_v12  ;;  %1409 = vmatmul.bf16.vlgmr.msrb.gmra.mxu1 %v3023_v12 }
 0x177   : > { %1465 = vmatpush.bf16.msra.mxu0 %v1944_v60 }
 0x17a   : > { %1390 = vmatmul.bf16.vlgmr.msrb.gmra.mxu0 %v3064_v37  ;;  %1428 = vmatmul.bf16.vlgmr.msrb.gmra.mxu2 %v3064_v37 }
 0x184   : > { %1376 = vmatmul.bf16.gmra.mxu3 %v3131_v11  ;;  %1414 = vmatmul.bf16.gmra.mxu1 %v3131_v11 }
 0x18a   : > { %1395 = vmatmul.bf16.gmra.mxu0 %v3172_v34  ;;  %1433 = vmatmul.bf16.gmra.mxu2 %v3172_v34 }
 0x194   : > { %1447 = vmatmul.bf16.vlgmr.msrb.gmra.mxu3 %v3023_v12 }
 0x19a   : > { %1466 = vmatmul.bf16.vlgmr.msra.gmra.mxu0 %v3064_v37 }
 0x1a4   : > { %1452 = vmatmul.bf16.gmra.mxu3 %v3131_v11 }
 0x1aa   : > { %1471 = vmatmul.bf16.gmra.mxu0 %v3172_v34 }
 0x1b1   : > { %v1258_v61 = vpop.f32.mrf.mxu1 }
 0x1b2   : > { %v1259_v5 = vadd.f32 %v1258_v61, %v622_v3 }
 0x1b7   : > { %v1220_v1 = vpop.f32.mrf.mxu3  ;;  %v1239_v2 = vpop.f32.mrf.mxu0 }
 0x1b8   : > { %v1221_v4 = vadd.f32 %v1220_v1, %v621_v0 }
 0x1b9   : > { %v1260_v12 = vpop.f32.mrf.mxu1 }
 0x1ba   : > { %v1240_v37 = vadd.f32 %v1239_v2, %v1221_v4  ;;  %v1261_v13 = vadd.f32 %v1260_v12, %v622_v3 }
 0x1bc   : > { %2320 = vtanh.f32 %v1240_v37 }
 0x1bd   : > { %v1277_v11 = vpop.f32.mrf.mxu2 }
 0x1be   : > { %v1278_v34 = vadd.f32 %v1277_v11, %v1259_v5 }
 0x1bf   : > { %v1222_v6 = vpop.f32.mrf.mxu3  ;;  %v1241_v36 = vpop.f32.mrf.mxu0 }
 0x1c0   : > { %2322 = vtanh.f32 %v1278_v34  ;;  %v1223_v7 = vadd.f32 %v1222_v6, %v621_v0 }
 0x1c1   : > { %v1263_v8 = vpop.f32.mrf.mxu1 }
 0x1c2   : > { %v2321_v9 = vpop.eup %2320  ;;  %v1242_v10 = vadd.f32 %v1241_v36, %v1223_v7  ;;  %v1264_v23 = vadd.f32 %v1263_v8, %v622_v3 }
 0x1c3   : > { %1505 = vst [vmem:[%s3374_s8] sm:$0xff] %v2321_v9 }
 0x1c4   : > { %2324 = vtanh.f32 %v1242_v10 }
 0x1c5   : > { %v1279_v14 = vpop.f32.mrf.mxu2 }
 0x1c6   : > { %v2323_v15 = vpop.eup %2322  ;;  %v1280_v16 = vadd.f32 %v1279_v14, %v1261_v13  ;;  %v625_v13 = vperm.slane %v3367_v62, 4 }
 0x1c7   : > { %1506 = vst [vmem:[%s3374_s8 + $0x8] sm:$0xff] %v2323_v15  ;;  %v1225_v17 = vpop.f32.mrf.mxu3  ;;  %v1244_v18 = vpop.f32.mrf.mxu0 }
 0x1c8   : > { %2326 = vtanh.f32 %v1280_v16  ;;  %v1226_v19 = vadd.f32 %v1225_v17, %v621_v0 }
 0x1c9   : > { %v1265_v20 = vpop.f32.mrf.mxu1 }
 0x1ca   : > { %v2325_v21 = vpop.eup %2324  ;;  %v1245_v22 = vadd.f32 %v1244_v18, %v1226_v19  ;;  %v1266_v32 = vadd.f32 %v1265_v20, %v622_v3  ;;  %v626_v19 = vperm.slane %v3367_v62, 5 }
 0x1cb   : > { %1513 = vst [vmem:[%s3374_s8 + $0x38] sm:$0xff] %v2325_v21 }
 0x1cc   : > { %2328 = vtanh.f32 %v1245_v22 }
 0x1cd   : > { %v1282_v63 = vpop.f32.mrf.mxu2 }
 0x1ce   : > { %v2327_v24 = vpop.eup %2326  ;;  %v1283_v25 = vadd.f32 %v1282_v63, %v1264_v23 }
 0x1cf   : > { %1514 = vst [vmem:[%s3374_s8 + $0x40] sm:$0xff] %v2327_v24  ;;  %v1227_v26 = vpop.f32.mrf.mxu3  ;;  %v1246_v27 = vpop.f32.mrf.mxu0 }
 0x1d0   : > { %2330 = vtanh.f32 %v1283_v25  ;;  %v1228_v28 = vadd.f32 %v1227_v26, %v621_v0 }
 0x1d1   : > { %v1334_v29 = vpop.f32.mrf.mxu1 }
 0x1d2   : > { %v2329_v30 = vpop.eup %2328  ;;  %v1247_v31 = vadd.f32 %v1246_v27, %v1228_v28  ;;  %v1335_v47 = vadd.f32 %v1334_v29, %v624_v42 }
 0x1d3   : > { %1520 = vst [vmem:[%s3374_s8 + $0x70] sm:$0xff] %v2329_v30 }
 0x1d4   : > { %2332 = vtanh.f32 %v1247_v31 }
 0x1d5   : > { %v1284_v35 = vpop.f32.mrf.mxu2 }
 0x1d6   : > { %v2331_v38 = vpop.eup %2330  ;;  %v1285_v39 = vadd.f32 %v1284_v35, %v1266_v32 }
 0x1d7   : > { %1521 = vst [vmem:[%s3374_s8 + $0x78] sm:$0xff] %v2331_v38  ;;  %v1296_v40 = vpop.f32.mrf.mxu3  ;;  %v1315_v41 = vpop.f32.mrf.mxu0 }
 0x1d8   : > { %2334 = vtanh.f32 %v1285_v39  ;;  %v1297_v43 = vadd.f32 %v1296_v40, %v623_v33 }
 0x1d9   : > { %v1336_v44 = vpop.f32.mrf.mxu1 }
 0x1da   : > { %v2333_v45 = vpop.eup %2332  ;;  %v1316_v46 = vadd.f32 %v1315_v41, %v1297_v43  ;;  %v1337_v57 = vadd.f32 %v1336_v44, %v624_v42 }
 0x1db   : > { %1527 = vst [vmem:[%s3374_s8 + $0xa8] sm:$0xff] %v2333_v45 }
 0x1dc   : > { %2336 = vtanh.f32 %v1316_v46 }
 0x1dd   : > { %v1353_v48 = vpop.f32.mrf.mxu2 }
 0x1de   : > { %v2335_v49 = vpop.eup %2334  ;;  %v1354_v50 = vadd.f32 %v1353_v48, %v1335_v47 }
 0x1df   : > { %1528 = vst [vmem:[%s3374_s8 + $0xb0] sm:$0xff] %v2335_v49  ;;  %v1298_v51 = vpop.f32.mrf.mxu3  ;;  %v1317_v52 = vpop.f32.mrf.mxu0 }
 0x1e0   : > { %2338 = vtanh.f32 %v1354_v50  ;;  %v1299_v53 = vadd.f32 %v1298_v51, %v623_v33 }
 0x1e1   : > { %v1339_v54 = vpop.f32.mrf.mxu1 }
 0x1e2   : > { %v2337_v55 = vpop.eup %2336  ;;  %v1318_v56 = vadd.f32 %v1317_v52, %v1299_v53  ;;  %v1340_v12 = vadd.f32 %v1339_v54, %v624_v42 }
 0x1e3   : > { %1507 = vst [vmem:[%s3374_s8 + $0x10] sm:$0xff] %v2337_v55 }
 0x1e4   : > { %2340 = vtanh.f32 %v1318_v56  ;;  %v627_v56 = vperm.slane %v3367_v62, 6 }
 0x1e5   : > { %v1355_v58 = vpop.f32.mrf.mxu2 }
 0x1e6   : > { %v2339_v59 = vpop.eup %2338  ;;  %v1356_v60 = vadd.f32 %v1355_v58, %v1337_v57 }
 0x1e7   : > { %1508 = vst [vmem:[%s3374_s8 + $0x18] sm:$0xff] %v2339_v59  ;;  %v1301_v61 = vpop.f32.mrf.mxu3  ;;  %v1320_v0 = vpop.f32.mrf.mxu0 }
 0x1e8   : > { %2342 = vtanh.f32 %v1356_v60  ;;  %v1302_v1 = vadd.f32 %v1301_v61, %v623_v33 }
 0x1e9   : > { %v1341_v2 = vpop.f32.mrf.mxu1 }
 0x1ea   : > { %v2341_v3 = vpop.eup %2340  ;;  %v1321_v4 = vadd.f32 %v1320_v0, %v1302_v1  ;;  %v1342_v10 = vadd.f32 %v1341_v2, %v624_v42 }
 0x1eb   : > { %1515 = vst [vmem:[%s3374_s8 + $0x48] sm:$0xff] %v2341_v3 }
 0x1ec   : > { %2344 = vtanh.f32 %v1321_v4 }
 0x1ed   : > { %v1358_v37 = vpop.f32.mrf.mxu2 }
 0x1ee   : > { %v2343_v5 = vpop.eup %2342  ;;  %v1359_v11 = vadd.f32 %v1358_v37, %v1340_v12 }
 0x1ef   : > { %1516 = vst [vmem:[%s3374_s8 + $0x50] sm:$0xff] %v2343_v5  ;;  %v1303_v34 = vpop.f32.mrf.mxu3  ;;  %v1322_v6 = vpop.f32.mrf.mxu0 }
 0x1f0   : > { %2346 = vtanh.f32 %v1359_v11  ;;  %v1304_v36 = vadd.f32 %v1303_v34, %v623_v33 }
 0x1f1   : > { %v1410_v9 = vpop.f32.mrf.mxu1 }
 0x1f2   : > { %v2345_v7 = vpop.eup %2344  ;;  %v1323_v8 = vadd.f32 %v1322_v6, %v1304_v36  ;;  %v1411_v23 = vadd.f32 %v1410_v9, %v626_v19 }
 0x1f3   : > { %1522 = vst [vmem:[%s3374_s8 + $0x80] sm:$0xff] %v2345_v7 }
 0x1f4   : > { %2348 = vtanh.f32 %v1323_v8 }
 0x1f5   : > { %v1360_v14 = vpop.f32.mrf.mxu2 }
 0x1f6   : > { %v2347_v15 = vpop.eup %2346  ;;  %v1361_v16 = vadd.f32 %v1360_v14, %v1342_v10 }
 0x1f7   : > { %1523 = vst [vmem:[%s3374_s8 + $0x88] sm:$0xff] %v2347_v15  ;;  %v1372_v17 = vpop.f32.mrf.mxu3  ;;  %v1391_v18 = vpop.f32.mrf.mxu0 }
 0x1f8   : > { %2350 = vtanh.f32 %v1361_v16  ;;  %v1373_v20 = vadd.f32 %v1372_v17, %v625_v13 }
 0x1f9   : > { %v1412_v63 = vpop.f32.mrf.mxu1 }
 0x1fa   : > { %v2349_v21 = vpop.eup %2348  ;;  %v1392_v22 = vadd.f32 %v1391_v18, %v1373_v20  ;;  %v1413_v32 = vadd.f32 %v1412_v63, %v626_v19 }
 0x1fb   : > { %1529 = vst [vmem:[%s3374_s8 + $0xb8] sm:$0xff] %v2349_v21 }
 0x1fc   : > { %2352 = vtanh.f32 %v1392_v22 }
 0x1fd   : > { %v1429_v24 = vpop.f32.mrf.mxu2 }
 0x1fe   : > { %v2351_v25 = vpop.eup %2350  ;;  %v1430_v26 = vadd.f32 %v1429_v24, %v1411_v23 }
 0x1ff   : > { %1530 = vst [vmem:[%s3374_s8 + $0xc0] sm:$0xff] %v2351_v25  ;;  %v1374_v27 = vpop.f32.mrf.mxu3  ;;  %v1393_v28 = vpop.f32.mrf.mxu0 }
 0x200   : > { %2354 = vtanh.f32 %v1430_v26  ;;  %v1375_v29 = vadd.f32 %v1374_v27, %v625_v13 }
 0x201   : > { %v1415_v38 = vpop.f32.mrf.mxu1 }
 0x202   : > { %v2353_v30 = vpop.eup %2352  ;;  %v1394_v31 = vadd.f32 %v1393_v28, %v1375_v29  ;;  %v1416_v45 = vadd.f32 %v1415_v38, %v626_v19 }
 0x203   : > { %1509 = vst [vmem:[%s3374_s8 + $0x20] sm:$0xff] %v2353_v30 }
 0x204   : > { %2356 = vtanh.f32 %v1394_v31 }
 0x205   : > { %v1431_v33 = vpop.f32.mrf.mxu2 }
 0x206   : > { %v2355_v35 = vpop.eup %2354  ;;  %v1432_v39 = vadd.f32 %v1431_v33, %v1413_v32 }
 0x207   : > { %1510 = vst [vmem:[%s3374_s8 + $0x28] sm:$0xff] %v2355_v35  ;;  %v1377_v40 = vpop.f32.mrf.mxu3  ;;  %v1396_v41 = vpop.f32.mrf.mxu0 }
 0x208   : > { %2358 = vtanh.f32 %v1432_v39  ;;  %v1378_v42 = vadd.f32 %v1377_v40, %v625_v13 }
 0x209   : > { %v1417_v52 = vpop.f32.mrf.mxu1 }
 0x20a   : > { %v2357_v43 = vpop.eup %2356  ;;  %v1397_v44 = vadd.f32 %v1396_v41, %v1378_v42  ;;  %v1418_v55 = vadd.f32 %v1417_v52, %v626_v19 }
 0x20b   : > { %1517 = vst [vmem:[%s3374_s8 + $0x58] sm:$0xff] %v2357_v43 }
 0x20c   : > { %2360 = vtanh.f32 %v1397_v44 }
 0x20d   : > { %v1434_v46 = vpop.f32.mrf.mxu2 }
 0x20e   : > { %v2359_v47 = vpop.eup %2358  ;;  %v1435_v48 = vadd.f32 %v1434_v46, %v1416_v45 }
 0x20f   : > { %1518 = vst [vmem:[%s3374_s8 + $0x60] sm:$0xff] %v2359_v47  ;;  %v1379_v49 = vpop.f32.mrf.mxu3  ;;  %v1398_v50 = vpop.f32.mrf.mxu0 }
 0x210   : > { %2362 = vtanh.f32 %v1435_v48  ;;  %v1380_v51 = vadd.f32 %v1379_v49, %v625_v13 }
 0x212   : > { %v2361_v53 = vpop.eup %2360  ;;  %v1399_v54 = vadd.f32 %v1398_v50, %v1380_v51 }
 0x213   : > { %1524 = vst [vmem:[%s3374_s8 + $0x90] sm:$0xff] %v2361_v53 }
 0x214   : > { %2364 = vtanh.f32 %v1399_v54 }
 0x215   : > { %v1436_v57 = vpop.f32.mrf.mxu2 }
 0x216   : > { %v2363_v58 = vpop.eup %2362  ;;  %v1437_v59 = vadd.f32 %v1436_v57, %v1418_v55 }
 0x217   : > { %1525 = vst [vmem:[%s3374_s8 + $0x98] sm:$0xff] %v2363_v58  ;;  %v1448_v60 = vpop.f32.mrf.mxu3  ;;  %v1467_v61 = vpop.f32.mrf.mxu0 }
 0x218   : > { %2366 = vtanh.f32 %v1437_v59  ;;  %v1449_v0 = vadd.f32 %v1448_v60, %v627_v56 }
 0x21a   : > { %v2365_v1 = vpop.eup %2364  ;;  %v1468_v2 = vadd.f32 %v1467_v61, %v1449_v0 }
 0x21b   : > { %1531 = vst [vmem:[%s3374_s8 + $0xc8] sm:$0xff] %v2365_v1 }
 0x21c   : > { %2368 = vtanh.f32 %v1468_v2 }
 0x21e   : > { %v2367_v3 = vpop.eup %2366 }
 0x21f   : > { %1532 = vst [vmem:[%s3374_s8 + $0xd0] sm:$0xff] %v2367_v3  ;;  %v1450_v4 = vpop.f32.mrf.mxu3  ;;  %v1469_v12 = vpop.f32.mrf.mxu0 }
 0x220   : > { %v1451_v62 = vadd.f32 %v1450_v4, %v627_v56 }
 0x222   : > { %v2369_v37 = vpop.eup %2368  ;;  %v1470_v5 = vadd.f32 %v1469_v12, %v1451_v62 }
 0x223   : > { %1512 = vst.msk [vmem:[%s3374_s8 + $0x30] sm:$0xff] %vm1511_vm1, %v2369_v37 }
 0x224   : > { %2370 = vtanh.f32 %v1470_v5 }
 0x227   : > { %v1453_v11 = vpop.f32.mrf.mxu3  ;;  %v1472_v34 = vpop.f32.mrf.mxu0 }
 0x228   : > { %v1454_v6 = vadd.f32 %v1453_v11, %v627_v56 }
 0x22a   : > { %v2371_v36 = vpop.eup %2370  ;;  %v1473_v7 = vadd.f32 %v1472_v34, %v1454_v6 }
 0x22b   : > { %1519 = vst.msk [vmem:[%s3374_s8 + $0x68] sm:$0xff] %vm1511_vm1, %v2371_v36 }
 0x22c   : > { %2372 = vtanh.f32 %v1473_v7 }
 0x22f   : > { %v1455_v8 = vpop.f32.mrf.mxu3  ;;  %v1474_v10 = vpop.f32.mrf.mxu0 }
 0x230   : > { %v1456_v9 = vadd.f32 %v1455_v8, %v627_v56 }
 0x232   : > { %v2373_v13 = vpop.eup %2372  ;;  %v1475_v14 = vadd.f32 %v1474_v10, %v1456_v9 }
 0x233   : > { %1526 = vst.msk [vmem:[%s3374_s8 + $0xa0] sm:$0xff] %vm1511_vm1, %v2373_v13 }
 0x234   : > { %2374 = vtanh.f32 %v1475_v14 }
 0x23a   : > { %v2375_v15 = vpop.eup %2374 }
 0x23b   : > { %1533 = vst.msk [vmem:[%s3374_s8 + $0xd8] sm:$0xff] %vm1511_vm1, %v2375_v15 }
 0x23c   : > { %2403 = shalt.err (!%p2400_p3)
}
 0x23d   : > { %s2440_s23 = smov 896   ;;  %s2441_s8 = smov 56  }
 0x23e   : > { %2278 = dma.vmem_to_hbm [thread:$0]  (%p2520_p5), %s1549_s15, 3584, %s1551_s18, %s1535_s28, %s2440_s23, %s2440_s23, %s2441_s8  }
 0x23f PF: > { %p2284_p4 = scmp.ge.s32.totalorder %s2438_s27, 2  ;;  %s1565_s13 = sand.u32 1, %s2426_s24  }
 0x240   : > { %s1566_s16 = scalar_lea.sflag [#allocation3], %s1565_s13 }
 0x241   : > { %p2281_p7 = pnand %p2284_p4, %p2524_p6 }
 0x243   : > { %p2282_p8 = pneg %p2281_p7 }
 0x245   : > { %2421 = dma.done.wait (%p2282_p8), %s1566_s16, 3584  }
 0x246   : > { %2423 = vsyncadd (%p2282_p8), %s1566_s16, 4294963712  ;;  %p17_p9 = scmp.ge.s32.totalorder %s2507_s30, 4   ;;  %s3457_s24 = smov %s2430_s25 }
 0x247   : > { %s3458_s25 = smov %s2434_s26  ;;  %s3459_s26 = smov %s2518_s10 }
 0x248   : > { %s3460_s27 = smov %s2507_s30  ;;  %19 = sbr.rel (!%p17_p9) target bundleno = 3 (0x3), region = 83 }
 0x24d   :  { %1572 = vsyncpa [#allocation3], 1 }
 0x24e   :  { %1574 = vsyncpa [#allocation3 + $0x1], 1 }

</bundles_post_ra>
